<compile_context>
chip_gen: v5e
topology: v5e:2x2
jax: 0.10.0
libtpu: 0.0.40
codegen_flags: <defaults>
</compile_context>

<pallas_src>
import math

import jax
import jax.numpy as jnp
from jax.experimental import pallas as pl
from jax.experimental.pallas import tpu as pltpu


def _transition_kernel(x_ref, scale_ref, shift_ref, w_ref, o_ref):
    # x_ref:     (4, Cin, T)  four 2x2-pool phases; Cin on sublanes,
    #                         T = (images in this block) * Sp on lanes.
    # scale_ref: (Cin, 1)     gamma / sqrt(running_var + eps)
    # shift_ref: (Cin, 1)     beta - running_mean * scale
    # w_ref:     (Cout, Cin)  1x1 conv weight (matmul dtype)
    # o_ref:     (Cout, T)    lane-dense output block
    sc = scale_ref[...]                       # (Cin, 1) -> lane-splat broadcast
    sh = shift_ref[...]

    def bn_relu(a):                           # (Cin, T); f32 VPU math (v5e safe)
        return jnp.maximum(a.astype(jnp.float32) * sc + sh, 0.0)

    # BN + ReLU per phase, then 2x2 average pool = mean of the four phases.
    p = (bn_relu(x_ref[0]) + bn_relu(x_ref[1]) +
         bn_relu(x_ref[2]) + bn_relu(x_ref[3])) * 0.25           # (Cin, T) f32

    # 1x1 conv commuted after the pool: single NN matmul, weights stationary,
    # T (multiple of 128) streamed on lanes, f32 accumulation on the MXU.
    o_ref[...] = jnp.dot(
        w_ref[...], p.astype(w_ref.dtype),
        preferred_element_type=jnp.float32).astype(o_ref.dtype)


def _vmem_capacity_bytes():
    try:
        return int(pltpu.get_tpu_info().vmem_capacity_bytes)
    except Exception:
        return 64 << 20                      # v7x-conservative default


def _plan_blocks(N, S, Cin, Cout, in_itemsize, vmem_cap):
    """Pick (Sp, bblk, steps): per-image lane width (padded so every block's
    lane dim is a multiple of 128), images per grid step, grid length."""
    g = math.gcd(S, 128)
    bmul = 128 // g                          # bblk multiple keeping bblk*S % 128 == 0
    Sp = S
    if bmul > 8:                             # awkward S: pad each image's lanes
        Sp = -(-S // 128) * 128
        bmul = 1

    # Per-image VMEM working set with (sublane, 128) padding.
    sub_in = 8 * max(1, 4 // in_itemsize)
    pc_in = -(-Cin // sub_in) * sub_in
    pc32 = -(-Cin // 8) * 8
    po = -(-Cout // 8) * 8
    per_image = (2 * 4 * pc_in * Sp * in_itemsize    # input block, double-buffered
                 + 2 * po * Sp * 4                   # output block, double-buffered
                 + 2 * pc32 * Sp * 4)                # pooled f32 intermediate
    budget = vmem_cap // 2                           # headroom for the rest
    bblk_max = max(1, budget // per_image)
    bblk_max = max(bmul, (bblk_max // bmul) * bmul)
    bblk_max = min(bblk_max, -(-N // bmul) * bmul)   # no bigger than padded N

    best = None
    for b in range(bmul, bblk_max + 1, bmul):
        steps = -(-N // b)
        waste = steps * b - N                        # zero-padded images
        odd = 0 if (steps == 1 or steps % 2 == 0) else 1   # v7x 2-TC balance
        key = (waste, odd, -b)
        if best is None or key < best[0]:
            best = (key, b, steps)
    _, bblk, steps = best
    return Sp, bblk, steps


def transition_forward(x_nchw, gamma, beta, running_mean, running_var, conv_w,
                       eps=1e-5, matmul_dtype=None, out_dtype=jnp.float32):
    """Pallas implementation of Transition.forward.  Input/output are NCHW."""
    N, Cin, H, W = x_nchw.shape
    Cout = conv_w.shape[0]
    Hp, Wp = H // 2, W // 2
    S = Hp * Wp

    if matmul_dtype is None:
        # bf16 inputs stay bf16 into the MXU (f32 accumulate); f32 stays f32.
        matmul_dtype = (x_nchw.dtype if jnp.dtype(x_nchw.dtype).itemsize < 4
                        else jnp.float32)

    vmem_cap = _vmem_capacity_bytes()
    in_itemsize = jnp.dtype(x_nchw.dtype).itemsize
    Sp, bblk, steps = _plan_blocks(N, S, Cin, Cout, in_itemsize, vmem_cap)
    Npad = bblk * steps
    T = bblk * Sp

    # ---- layout plumbing (no arithmetic hoisted): NCHW -> (4, Cin, Npad*Sp) ----
    # TODO(synk): this phase-split transpose is one extra HBM pass over the
    # input; fuse it (allow_input_fusion / upstream channels-last layout) if it
    # shows up in the profile.
    x = x_nchw[:, :, :2 * Hp, :2 * Wp]                 # floor crop for odd H/W
    x = x.reshape(N, Cin, Hp, 2, Wp, 2)
    x = jnp.transpose(x, (3, 5, 1, 0, 2, 4))           # (2, 2, Cin, N, Hp, Wp)
    x = x.reshape(4, Cin, N, S)
    if Npad != N or Sp != S:
        x = jnp.pad(x, ((0, 0), (0, 0), (0, Npad - N), (0, Sp - S)))
    x_ph = x.reshape(4, Cin, Npad * Sp)

    scale1 = (gamma.astype(jnp.float32)
              / jnp.sqrt(running_var.astype(jnp.float32) + eps))
    shift1 = beta.astype(jnp.float32) - running_mean.astype(jnp.float32) * scale1
    scale = scale1.reshape(Cin, 1)
    shift = shift1.reshape(Cin, 1)
    w = conv_w.reshape(Cout, Cin).astype(matmul_dtype)

    # ---- hot path: Pallas kernel, grid over lane-blocks of bblk images ----
    out_flat = pl.pallas_call(
        _transition_kernel,
        out_shape=jax.ShapeDtypeStruct((Cout, Npad * Sp), out_dtype),
        grid_spec=pltpu.PrefetchScalarGridSpec(
            num_scalar_prefetch=0,
            grid=(steps,),
            in_specs=[
                pl.BlockSpec((4, Cin, T), lambda n: (0, 0, n)),
                pl.BlockSpec((Cin, 1), lambda n: (0, 0)),
                pl.BlockSpec((Cin, 1), lambda n: (0, 0)),
                pl.BlockSpec((Cout, Cin), lambda n: (0, 0)),
            ],
            out_specs=pl.BlockSpec((Cout, T), lambda n: (0, n)),
        ),
        compiler_params=pltpu.CompilerParams(
            dimension_semantics=("parallel",),
            vmem_limit_bytes=int(min(vmem_cap * 3 // 4, 96 << 20)),
        ),
    )(x_ph, scale, shift, w)

    # (Cout, Npad*Sp) -> NCHW: strip padding, then one cheap transpose of an
    # array ~4x(Cin/Cout) smaller than the input.
    out = out_flat.reshape(Cout, Npad, Sp)[:, :N, :S]
    out = out.reshape(Cout, N, Hp, Wp)
    return jnp.transpose(out, (1, 0, 2, 3))


def transition_reference(x, gamma, beta, mean, var, conv_w, eps=1e-5):
    """Pure-JAX reference with identical (eval-mode) semantics: conv THEN pool."""
    N, Cin, H, W = x.shape
    Cout = conv_w.shape[0]
    xn = (x - mean[None, :, None, None]) / jnp.sqrt(var[None, :, None, None] + eps)
    y = jnp.maximum(xn * gamma[None, :, None, None] + beta[None, :, None, None], 0.0)
    z = jnp.einsum("nchw,oc->nohw", y, conv_w.reshape(Cout, Cin))
    return z.reshape(N, Cout, H // 2, 2, W // 2, 2).mean(axis=(3, 5))


if __name__ == "__main__":
    # small shapes consistent with the module: inplanes=8, outplanes=4
    N, Cin, Cout, H, W = 2, 8, 4, 16, 16

    key = jax.random.PRNGKey(0)
    kx, kw = jax.random.split(key)
    x = jax.random.normal(kx, (N, Cin, H, W), dtype=jnp.float32)

    # deterministic, non-trivial parameters
    gamma = 1.0 + 0.1 * jnp.arange(Cin, dtype=jnp.float32)
    beta = 0.05 * jnp.arange(Cin, dtype=jnp.float32) - 0.1
    running_mean = 0.02 * jnp.arange(Cin, dtype=jnp.float32)
    running_var = 1.0 + 0.05 * jnp.arange(Cin, dtype=jnp.float32)
    conv_w = (jax.random.normal(kw, (Cout, Cin, 1, 1), dtype=jnp.float32)
              * (1.0 / jnp.sqrt(Cin)))

    out = transition_forward(x, gamma, beta, running_mean, running_var, conv_w)
    out = jax.block_until_ready(out)

    ref = transition_reference(x, gamma, beta, running_mean, running_var, conv_w)
    assert out.shape == (N, Cout, H // 2, W // 2), out.shape
    assert jnp.allclose(out, ref, atol=1e-5, rtol=1e-5), \
        float(jnp.max(jnp.abs(out - ref)))

    print("KERNEL_OK")
</pallas_src>

<mosaic_0001>
module attributes {stable_mosaic.version = 11 : i64} {
  func.func @_transition_kernel(%arg0: i32, %arg1: memref<4x8x128xf32, #tpu.memory_space<vmem>>, %arg2: memref<8x1xf32, #tpu.memory_space<vmem>>, %arg3: memref<8x1xf32, #tpu.memory_space<vmem>>, %arg4: memref<4x8xf32, #tpu.memory_space<vmem>>, %arg5: memref<4x128xf32, #tpu.memory_space<vmem>>) attributes {dimension_semantics = [#tpu.dimension_semantics<parallel>], iteration_bounds = array<i64: 1>, scalar_prefetch = 0 : i64, scratch_operands = 0 : i64, tpu.core_type = #tpu.core_type<tc>, window_params = [{transform_indices = @transform_0, window_bounds = array<i64: 4, 8, 128>}, {pipeline_mode = #tpu.pipeline_mode<synchronous>, transform_indices = @transform_1, window_bounds = array<i64: 8, 1>}, {pipeline_mode = #tpu.pipeline_mode<synchronous>, transform_indices = @transform_2, window_bounds = array<i64: 8, 1>}, {pipeline_mode = #tpu.pipeline_mode<synchronous>, transform_indices = @transform_3, window_bounds = array<i64: 4, 8>}, {transform_indices = @transform_4, window_bounds = array<i64: 4, 128>}]} {
    %c0 = arith.constant 0 : index
    %c0_0 = arith.constant 0 : index
    %0 = vector.load %arg2[%c0, %c0_0] : memref<8x1xf32, #tpu.memory_space<vmem>>, vector<8x1xf32>
    %c0_1 = arith.constant 0 : index
    %c0_2 = arith.constant 0 : index
    %1 = vector.load %arg3[%c0_1, %c0_2] : memref<8x1xf32, #tpu.memory_space<vmem>>, vector<8x1xf32>
    %c0_3 = arith.constant 0 : index
    %c0_4 = arith.constant 0 : index
    %c0_5 = arith.constant 0 : index
    %2 = vector.load %arg1[%c0_3, %c0_4, %c0_5] : memref<4x8x128xf32, #tpu.memory_space<vmem>>, vector<1x8x128xf32>
    %3 = vector.shape_cast %2 : vector<1x8x128xf32> to vector<8x128xf32>
    %4 = vector.broadcast %0 : vector<8x1xf32> to vector<8x128xf32>
    %5 = arith.mulf %3, %4 : vector<8x128xf32>
    %6 = vector.broadcast %1 : vector<8x1xf32> to vector<8x128xf32>
    %7 = arith.addf %5, %6 : vector<8x128xf32>
    %cst = arith.constant 0.000000e+00 : f32
    %8 = vector.broadcast %cst : f32 to vector<8x128xf32>
    %9 = arith.maximumf %7, %8 : vector<8x128xf32>
    %c1 = arith.constant 1 : index
    %c0_6 = arith.constant 0 : index
    %c0_7 = arith.constant 0 : index
    %10 = vector.load %arg1[%c1, %c0_6, %c0_7] : memref<4x8x128xf32, #tpu.memory_space<vmem>>, vector<1x8x128xf32>
    %11 = vector.shape_cast %10 : vector<1x8x128xf32> to vector<8x128xf32>
    %12 = vector.broadcast %0 : vector<8x1xf32> to vector<8x128xf32>
    %13 = arith.mulf %11, %12 : vector<8x128xf32>
    %14 = vector.broadcast %1 : vector<8x1xf32> to vector<8x128xf32>
    %15 = arith.addf %13, %14 : vector<8x128xf32>
    %cst_8 = arith.constant 0.000000e+00 : f32
    %16 = vector.broadcast %cst_8 : f32 to vector<8x128xf32>
    %17 = arith.maximumf %15, %16 : vector<8x128xf32>
    %18 = arith.addf %9, %17 : vector<8x128xf32>
    %c2 = arith.constant 2 : index
    %c0_9 = arith.constant 0 : index
    %c0_10 = arith.constant 0 : index
    %19 = vector.load %arg1[%c2, %c0_9, %c0_10] : memref<4x8x128xf32, #tpu.memory_space<vmem>>, vector<1x8x128xf32>
    %20 = vector.shape_cast %19 : vector<1x8x128xf32> to vector<8x128xf32>
    %21 = vector.broadcast %0 : vector<8x1xf32> to vector<8x128xf32>
    %22 = arith.mulf %20, %21 : vector<8x128xf32>
    %23 = vector.broadcast %1 : vector<8x1xf32> to vector<8x128xf32>
    %24 = arith.addf %22, %23 : vector<8x128xf32>
    %cst_11 = arith.constant 0.000000e+00 : f32
    %25 = vector.broadcast %cst_11 : f32 to vector<8x128xf32>
    %26 = arith.maximumf %24, %25 : vector<8x128xf32>
    %27 = arith.addf %18, %26 : vector<8x128xf32>
    %c3 = arith.constant 3 : index
    %c0_12 = arith.constant 0 : index
    %c0_13 = arith.constant 0 : index
    %28 = vector.load %arg1[%c3, %c0_12, %c0_13] : memref<4x8x128xf32, #tpu.memory_space<vmem>>, vector<1x8x128xf32>
    %29 = vector.shape_cast %28 : vector<1x8x128xf32> to vector<8x128xf32>
    %30 = vector.broadcast %0 : vector<8x1xf32> to vector<8x128xf32>
    %31 = arith.mulf %29, %30 : vector<8x128xf32>
    %32 = vector.broadcast %1 : vector<8x1xf32> to vector<8x128xf32>
    %33 = arith.addf %31, %32 : vector<8x128xf32>
    %cst_14 = arith.constant 0.000000e+00 : f32
    %34 = vector.broadcast %cst_14 : f32 to vector<8x128xf32>
    %35 = arith.maximumf %33, %34 : vector<8x128xf32>
    %36 = arith.addf %27, %35 : vector<8x128xf32>
    %cst_15 = arith.constant 2.500000e-01 : f32
    %37 = vector.broadcast %cst_15 : f32 to vector<8x128xf32>
    %38 = arith.mulf %36, %37 : vector<8x128xf32>
    %c0_16 = arith.constant 0 : index
    %c0_17 = arith.constant 0 : index
    %39 = vector.load %arg4[%c0_16, %c0_17] : memref<4x8xf32, #tpu.memory_space<vmem>>, vector<4x8xf32>
    %cst_18 = arith.constant dense<0.000000e+00> : vector<4x128xf32>
    %40 = tpu.matmul %39, %38, %cst_18 {dimension_numbers = #tpu.dot_dimension_numbers<[1], [0], [0], [1], [0, 0, 1, 1], [], []>} : vector<4x8xf32>, vector<8x128xf32>, vector<4x128xf32> -> vector<4x128xf32>
    %c0_19 = arith.constant 0 : index
    %c0_20 = arith.constant 0 : index
    %41 = vector.load %arg5[%c0_19, %c0_20] : memref<4x128xf32, #tpu.memory_space<vmem>>, vector<4x128xf32>
    tpu.vector_store %arg5[%c0_19, %c0_20], %40 {strides = array<i32>} : memref<4x128xf32, #tpu.memory_space<vmem>>, vector<4x128xf32>,
    return
  }
  func.func @transform_0(%arg0: i32) -> (i32, i32, i32) {
    %c0_i32 = arith.constant 0 : i32
    %c0_i32_0 = arith.constant 0 : i32
    %c0_i32_1 = arith.constant 0 : i32
    return %c0_i32, %c0_i32_0, %arg0 : i32, i32, i32
  }
  func.func @transform_1(%arg0: i32) -> (i32, i32) {
    %c0_i32 = arith.constant 0 : i32
    %c0_i32_0 = arith.constant 0 : i32
    %c0_i32_1 = arith.constant 0 : i32
    return %c0_i32, %c0_i32_0 : i32, i32
  }
  func.func @transform_2(%arg0: i32) -> (i32, i32) {
    %c0_i32 = arith.constant 0 : i32
    %c0_i32_0 = arith.constant 0 : i32
    %c0_i32_1 = arith.constant 0 : i32
    return %c0_i32, %c0_i32_0 : i32, i32
  }
  func.func @transform_3(%arg0: i32) -> (i32, i32) {
    %c0_i32 = arith.constant 0 : i32
    %c0_i32_0 = arith.constant 0 : i32
    %c0_i32_1 = arith.constant 0 : i32
    return %c0_i32, %c0_i32_0 : i32, i32
  }
  func.func @transform_4(%arg0: i32) -> (i32, i32) {
    %c0_i32 = arith.constant 0 : i32
    %c0_i32_0 = arith.constant 0 : i32
    return %c0_i32, %arg0 : i32, i32
  }
}

</mosaic_0001>

<bundles_post_ra>
// kernel: tpu_custom_call.1
= control target key start
LH: loop header
LB: loop body
LE: loop exit
PB: predicated region body
PF: predicated region fallthrough
CT: control target
= control target key end

     0   :  { %9 = vsyncpa [#allocation3], 0  ;;  %s216_s0 = inlined_call_operand.hbm [shape: f32[4,8,128], index: 0, kind: input, shape index: {}]   ;;  %s217_s1 = inlined_call_operand.vmem [shape: f32[8,1], index: 1, kind: input, shape index: {}]   ;;  %s218_s2 = inlined_call_operand.vmem [shape: f32[8,1], index: 2, kind: input, shape index: {}]   ;;  %s219_s3 = inlined_call_operand.vmem [shape: f32[4,8], index: 3, kind: input, shape index: {}]   ;;  %s220_s4 = inlined_call_operand.hbm [shape: f32[4,128], index: 4, kind: output, shape index: {}]  }
   0x1   :  { %10 = vsyncpa [#allocation4], 0  ;;  %s15_s17 = sshll.u32 %s216_s0, 4  ;;  %s171_s18 = smov [#allocation2]   ;;  %s16_s17 = int_to_ptr.hbm [resolvable:$true] %s15_s17 }
   0x2   :  { %s17_s19 = sshll.u32 %s171_s18, 4  ;;  %s172_s20 = smov 128   ;;  %s18_s19 = int_to_ptr.vmem [resolvable:$true] %s17_s19 }
   0x3   :  { %s173_s21 = smov 8  }
   0x4   :  { %23 = dma.hbm_to_vmem [thread:$0]  %s16_s17, 512, %s18_s19, [#allocation3], %s172_s20, %s172_s20, %s173_s21  }
   0x5   :  { %167 = dma.done.wait [#allocation3], 512  }
   0x6   :  { %168 = vsyncadd [#allocation3], 4294966784  ;;  %v174_v0 = vmov 0   ;;  %v34_v1 = vld [vmem:[%s217_s1] sm:$0xff]  ;;  %v51_v5 = vld [vmem:[#allocation2 + $0x8] sm:$0xff]  ;;  %vm70_vm0 = vcmask 64512  }
   0x7   :  { %118 = vset.pattern.permute.xlu0 %v174_v0  ;;  %v35_v2 = vld [vmem:[%s218_s2] sm:$0xff]  ;;  %v57_v6 = vld [vmem:[#allocation2 + $0x10] sm:$0xff]  ;;  %v63_v7 = vld [vmem:[#allocation2 + $0x18] sm:$0xff]  ;;  %s175_s2 = smov [#allocation5]   ;;  %s102_s29 = sshll.u32 %s220_s4, 4  ;;  %s103_s29 = int_to_ptr.hbm [resolvable:$true] %s102_s29 }
   0x8   :  { %39 = vperm.xlu0 %118, %v34_v1   ;;  %v36_v4 = vld [vmem:[#allocation2] sm:$0xff]  ;;  %s100_s26 = sshll.u32 %s175_s2, 4  ;;  %s101_s26 = int_to_ptr.vmem [resolvable:$true] %s100_s26 }
   0x9   :  { %v69_v25 = vld [vmem:[%s219_s3] sm:$0xf] }
  0x10   :  { %45 = vperm.xlu0 %118, %v35_v2  }
  0x7a   :  { %v40_v3 = vpop.permute.xlu0 %39 }
  0x7b   :  { %v42_v8 = vmul.f32 %v40_v3, %v36_v4  ;;  %v52_v9 = vmul.f32 %v51_v5, %v40_v3  ;;  %v58_v10 = vmul.f32 %v57_v6, %v40_v3  ;;  %v64_v15 = vmul.f32 %v63_v7, %v40_v3 }
  0x82   :  { %v46_v11 = vpop.permute.xlu0 %45 }
  0x83   :  { %v48_v12 = vadd.f32 %v46_v11, %v42_v8  ;;  %v53_v13 = vadd.f32 %v52_v9, %v46_v11  ;;  %v59_v14 = vadd.f32 %v58_v10, %v46_v11  ;;  %v65_v18 = vadd.f32 %v64_v15, %v46_v11 }
  0x85   :  { %v49_v16 = vmax.f32 %v48_v12, 0.0  ;;  %v54_v17 = vmax.f32 %v53_v13, 0.0  ;;  %v60_v19 = vmax.f32 %v59_v14, 0.0  ;;  %v66_v22 = vmax.f32 %v65_v18, 0.0 }
  0x87   :  { %v55_v20 = vadd.f32 %v54_v17, %v49_v16 }
  0x89   :  { %v61_v21 = vadd.f32 %v60_v19, %v55_v20 }
  0x8b   :  { %v67_v23 = vadd.f32 %v66_v22, %v61_v21 }
  0x8d   :  { %v68_v24 = vmul.f32 0.25, %v67_v23 }
  0x8f   :  { %89 = vmatpush.msra.mxu0 %v68_v24 }
  0x90   :  { %112 = vmatmul.msk.f32.vlgmr.msra.gmra.mxu0 %vm70_vm0, %v69_v25 }
 0x10d   :  { %v91_v26 = vpop.f32.mrf.mxu0 }
 0x10e   :  { %94 = vst [vmem:[#allocation5] sm:$0xf] %v91_v26 }
 0x10f   :  { %105 = dma.vmem_to_hbm [thread:$0]  %s101_s26, 64, %s103_s29, [#allocation4]  }
 0x110   :  { %169 = dma.done.wait [#allocation4], 64  }
 0x111   :  { %170 = vsyncadd [#allocation4], 4294967232 }
 0x112   :  { %110 = vsyncpa [#allocation3], 1 }
 0x113   :  { %111 = vsyncpa [#allocation4], 1 }

</bundles_post_ra>
